<compile_context>
chip_gen: v7x
topology: tpu7x:2x2x1
jax: 0.10.0
libtpu: 0.0.40
codegen_flags: <defaults>
</compile_context>

<pallas_src>
import functools

import jax
import jax.numpy as jnp
from jax.experimental import pallas as pl
from jax.experimental.pallas import tpu as pltpu

EPS = 1e-5


# ----------------------------------------------------------------------------
# generation-aware VMEM budgets
# ----------------------------------------------------------------------------
@functools.lru_cache(maxsize=None)
def _vmem_capacity_bytes():
    try:
        info = pltpu.get_tpu_info()
        cap = getattr(info, "vmem_capacity_bytes", None)
        if cap:
            return int(cap)
    except Exception:
        pass
    # Conservative default (v7x per-TC physical VMEM) if the query fails.
    return 64 * 1024 * 1024


def _budgets():
    vmem = _vmem_capacity_bytes()
    block_budget = (vmem * 3) // 8   # pipelined blocks + f32 temps (≈48 MiB on 128 MiB parts, 24 MiB on v7x)
    vmem_limit = (vmem * 7) // 8     # leave headroom for Mosaic-internal scratch
    return block_budget, vmem_limit


# ----------------------------------------------------------------------------
# tile selection
# ----------------------------------------------------------------------------
def _pick_tile_d(D):
    # Lane-dense feature tiles (multiple of 128) to avoid masked vst per row.
    # When D allows >=2 such tiles, keep >=2 so the "parallel" feature axis can
    # shard across TensorCores on megacore parts (v7x); otherwise a full-D block
    # (block dim == array dim is always legal, e.g. embed_dim=300).
    if D % 128 == 0 and D >= 256:
        return min(512, max(128, 128 * (D // 256)))
    return D


def _pick_tile_n(N, td, itemsize, block_budget):
    # Per node-row bytes: x + out blocks double-buffered in native dtype
    # (4*itemsize) plus fp32 upcast temporaries in the apply body (~8 B/elem).
    row_bytes = (4 * itemsize + 8) * td
    tn = block_budget // row_bytes
    tn = max(8, (tn // 8) * 8)
    tn = min(tn, 2048)  # MiB-scale blocks are already in the 85%+ roofline regime
    if tn >= N:
        return N
    return tn


# ----------------------------------------------------------------------------
# single-pass fused kernel (small N): stats + normalize in one sweep
# ----------------------------------------------------------------------------
def _fused_bn_kernel(x_ref, gamma_ref, beta_ref, o_ref, *, inv_n):
    x = x_ref[...].astype(jnp.float32)                        # [N, td]
    mean = jnp.sum(x, axis=0, keepdims=True) * inv_n          # [1, td]
    xc = x - mean
    var = jnp.sum(xc * xc, axis=0, keepdims=True) * inv_n     # centered (PyTorch-like)
    inv_std = jax.lax.rsqrt(var + EPS)
    scale = gamma_ref[...].astype(jnp.float32) * inv_std      # [1, td]
    o_ref[...] = (xc * scale + beta_ref[...].astype(jnp.float32)).astype(o_ref.dtype)


def _batchnorm_single_pass(x, gamma2, beta2, td, vmem_limit):
    N, D = x.shape
    itemsize = jnp.dtype(x.dtype).itemsize
    kernel = functools.partial(_fused_bn_kernel, inv_n=1.0 / N)
    return pl.pallas_call(
        kernel,
        out_shape=jax.ShapeDtypeStruct((N, D), x.dtype),
        grid=(pl.cdiv(D, td),),
        in_specs=[
            pl.BlockSpec((N, td), lambda j: (0, j)),
            pl.BlockSpec((1, td), lambda j: (0, j)),
            pl.BlockSpec((1, td), lambda j: (0, j)),
        ],
        out_specs=pl.BlockSpec((N, td), lambda j: (0, j)),
        compiler_params=pltpu.CompilerParams(
            dimension_semantics=("parallel",),
            vmem_limit_bytes=vmem_limit,
        ),
        cost_estimate=pl.CostEstimate(
            flops=5 * N * D, transcendentals=D,
            bytes_accessed=2 * N * D * itemsize),
    )(x, gamma2, beta2)


# ----------------------------------------------------------------------------
# two-pass path (large N): node-split stats reduction, then fused apply
# ----------------------------------------------------------------------------
def _stats_kernel(x_ref, sum_ref, ssq_ref, *, tn, n_valid, per_split, has_tail):
    i = pl.program_id(2)  # node-tile index within this split (reduction axis)

    @pl.when(i == 0)
    def _():
        sum_ref[...] = jnp.zeros_like(sum_ref)
        ssq_ref[...] = jnp.zeros_like(ssq_ref)

    x = x_ref[...].astype(jnp.float32)                        # [tn, td]
    g = pl.program_id(0) * per_split + i                      # global node-tile index

    def _accum(xv):
        sum_ref[...] += jnp.sum(xv, axis=0, keepdims=True)[None]
        ssq_ref[...] += jnp.sum(xv * xv, axis=0, keepdims=True)[None]

    if not has_tail:
        _accum(x)  # every tile is full and in range: pure 3-op/elem body
    else:
        nn_full = n_valid // tn  # number of complete in-range node tiles

        @pl.when(g < nn_full)
        def _():
            _accum(x)  # full tile, no masking cost

        @pl.when(g >= nn_full)
        def _():
            # Partial last tile or split overhang: mask invalid rows.  Uses the
            # UNCLAMPED global tile index, so an all-out-of-range overhang tile
            # contributes exactly zero (index_map clamps the DMA source).
            row = g * tn + jax.lax.broadcasted_iota(jnp.int32, x.shape, 0)
            _accum(jnp.where(row < n_valid, x, 0.0))


def _batchnorm_stats(x, tn, td, vmem_limit):
    N, D = x.shape
    itemsize = jnp.dtype(x.dtype).itemsize
    nd = pl.cdiv(D, td)
    nn_total = pl.cdiv(N, tn)
    nsplit = 2 if nn_total >= 2 else 1          # leading "parallel" axis for megacore
    per_split = pl.cdiv(nn_total, nsplit)
    has_tail = (N % tn != 0) or (nsplit * per_split != nn_total)

    kernel = functools.partial(_stats_kernel, tn=tn, n_valid=N,
                               per_split=per_split, has_tail=has_tail)

    def x_map(s, j, i):
        g = s * per_split + i
        return (jnp.minimum(g, nn_total - 1), j)  # clamp overhang tiles (masked to 0 in-kernel)

    return pl.pallas_call(
        kernel,
        out_shape=(
            jax.ShapeDtypeStruct((nsplit, 1, D), jnp.float32),
            jax.ShapeDtypeStruct((nsplit, 1, D), jnp.float32),
        ),
        grid=(nsplit, nd, per_split),  # reduction (node) axis last
        in_specs=[pl.BlockSpec((tn, td), x_map)],
        out_specs=(
            pl.BlockSpec((1, 1, td), lambda s, j, i: (s, 0, j)),
            pl.BlockSpec((1, 1, td), lambda s, j, i: (s, 0, j)),
        ),
        compiler_params=pltpu.CompilerParams(
            dimension_semantics=("parallel", "parallel", "arbitrary"),
            vmem_limit_bytes=vmem_limit,
        ),
        cost_estimate=pl.CostEstimate(
            flops=3 * N * D, transcendentals=0,
            bytes_accessed=N * D * itemsize + 2 * nsplit * D * 4),
    )(x)


def _apply_kernel(x_ref, sum_ref, ssq_ref, gamma_ref, beta_ref, o_ref, *, inv_n):
    # Fold partial stats + affine into per-column scale/shift inside the apply
    # sweep (tiny [1, td] VPU/EUP work; index maps keep these blocks resident
    # across the inner node axis) — removes a separate XLA dispatch and the HBM
    # round trip of intermediate (1, D) arrays.
    col_sum = jnp.sum(sum_ref[...], axis=0)                   # (nsplit,1,td) -> (1, td)
    col_ssq = jnp.sum(ssq_ref[...], axis=0)
    mean = col_sum * inv_n
    var = jnp.maximum(col_ssq * inv_n - mean * mean, 0.0)     # clamp (E[x^2]-m^2)
    inv_std = jax.lax.rsqrt(var + EPS)
    scale = gamma_ref[...].astype(jnp.float32) * inv_std
    shift = beta_ref[...].astype(jnp.float32) - mean * scale
    x = x_ref[...].astype(jnp.float32)
    o_ref[...] = (x * scale + shift).astype(o_ref.dtype)      # 2 VALU ops / element


def _batchnorm_apply(x, col_sum, col_ssq, gamma2, beta2, tn, td, vmem_limit):
    N, D = x.shape
    itemsize = jnp.dtype(x.dtype).itemsize
    nsplit = col_sum.shape[0]
    nd, nn = pl.cdiv(D, td), pl.cdiv(N, tn)
    kernel = functools.partial(_apply_kernel, inv_n=1.0 / N)
    return pl.pallas_call(
        kernel,
        out_shape=jax.ShapeDtypeStruct((N, D), x.dtype),
        # Node axis innermost: the stats/affine (*, td) blocks only change with
        # j, so they are NOT re-DMAed on every inner step.
        grid=(nd, nn),
        in_specs=[
            pl.BlockSpec((tn, td), lambda j, i: (i, j)),
            pl.BlockSpec((nsplit, 1, td), lambda j, i: (0, 0, j)),
            pl.BlockSpec((nsplit, 1, td), lambda j, i: (0, 0, j)),
            pl.BlockSpec((1, td), lambda j, i: (0, j)),
            pl.BlockSpec((1, td), lambda j, i: (0, j)),
        ],
        out_specs=pl.BlockSpec((tn, td), lambda j, i: (i, j)),
        compiler_params=pltpu.CompilerParams(
            dimension_semantics=("parallel", "parallel"),
            vmem_limit_bytes=vmem_limit,
        ),
        cost_estimate=pl.CostEstimate(
            flops=2 * N * D, transcendentals=D,
            bytes_accessed=2 * N * D * itemsize),
    )(x, col_sum, col_ssq, gamma2, beta2)


# ----------------------------------------------------------------------------
# public wrapper
# ----------------------------------------------------------------------------
@functools.partial(jax.jit, static_argnames=("force_two_pass", "tile_n", "tile_d"))
def normalize_gnn_batchnorm(x, gamma, beta, *, force_two_pass=False,
                            tile_n=None, tile_d=None):
    """Training-mode BatchNorm1d over nodes. x: [N, D]; gamma/beta: [D]."""
    N, D = x.shape
    itemsize = jnp.dtype(x.dtype).itemsize
    block_budget, vmem_limit = _budgets()
    td = tile_d if tile_d is not None else _pick_tile_d(D)

    gamma2 = gamma.reshape(1, D)
    beta2 = beta.reshape(1, D)

    # Single pass only when the whole node axis fits the VMEM block budget,
    # counting the double-buffered native-dtype blocks (4*itemsize) AND the
    # fp32 upcast/centered temporaries (~16 B/elem) the fused body creates.
    single_pass_bytes = (4 * itemsize + 16) * N * td
    if (not force_two_pass) and single_pass_bytes <= block_budget:
        return _batchnorm_single_pass(x, gamma2, beta2, td, vmem_limit)

    tn = tile_n if tile_n is not None else _pick_tile_n(N, td, itemsize, block_budget)
    tn = min(tn, N)
    col_sum, col_ssq = _batchnorm_stats(x, tn, td, vmem_limit)
    return _batchnorm_apply(x, col_sum, col_ssq, gamma2, beta2, tn, td, vmem_limit)


def normalize_gnn_forward(graph, x, gamma, beta):
    """Mirror of NormalizeGNN.forward(graph, tensor) for norm_type='batchnorm'.

    `graph` is accepted but unused by the batchnorm path (as in the reference).
    """
    # TODO(synk): other norm_type branches (supernorm/graphnorm/exprenorm/groupnorm/
    # nodenorm/meannorm/pairnorm) are not implemented; only the default 'batchnorm'.
    del graph
    return normalize_gnn_batchnorm(x, gamma, beta)


def _reference(x, gamma, beta):
    xf = x.astype(jnp.float32)
    mean = jnp.mean(xf, axis=0, keepdims=True)
    var = jnp.mean((xf - mean) ** 2, axis=0, keepdims=True)
    y = (xf - mean) / jnp.sqrt(var + EPS) * gamma[None, :] + beta[None, :]
    return y.astype(x.dtype)


if __name__ == "__main__":
    key = jax.random.PRNGKey(0)
    kx, kg, kb = jax.random.split(key, 3)

    # Small shapes consistent with the module: [num_nodes, embed_dim], default
    # embed_dim=300 (exercises the non-multiple-of-128 full-D-block path).
    N, D = 64, 300
    x = jax.random.normal(kx, (N, D), dtype=jnp.float32)
    gamma = 1.0 + 0.1 * jax.random.normal(kg, (D,), dtype=jnp.float32)
    beta = 0.1 * jax.random.normal(kb, (D,), dtype=jnp.float32)

    graph = None  # placeholder; unused by the batchnorm path
    out = jax.block_until_ready(normalize_gnn_forward(graph, x, gamma, beta))
    ref = _reference(x, gamma, beta)
    assert out.shape == x.shape and out.dtype == x.dtype
    assert jnp.allclose(out, ref, atol=2e-5, rtol=2e-5), "single-pass mismatch"

    # Exercise the N-tiled, core-split two-pass path at small shape by forcing
    # it, including a partial (masked) last node tile.
    N2, D2 = 200, 256
    x2 = jax.random.normal(jax.random.PRNGKey(1), (N2, D2), dtype=jnp.float32)
    g2 = 1.0 + 0.05 * jax.random.normal(jax.random.PRNGKey(2), (D2,), dtype=jnp.float32)
    b2 = 0.05 * jax.random.normal(jax.random.PRNGKey(3), (D2,), dtype=jnp.float32)
    out2 = jax.block_until_ready(
        normalize_gnn_batchnorm(x2, g2, b2, force_two_pass=True,
                                tile_n=64, tile_d=128))
    ref2 = _reference(x2, g2, b2)
    assert jnp.allclose(out2, ref2, atol=2e-5, rtol=2e-5), "two-pass mismatch"

    # Two-pass again with an odd number of node tiles (exercises the clamped
    # index_map + fully-masked overhang tile of the node split) plus a partial
    # last tile.
    N3, D3 = 136, 256
    x3 = jax.random.normal(jax.random.PRNGKey(4), (N3, D3), dtype=jnp.float32)
    g3 = 1.0 + 0.05 * jax.random.normal(jax.random.PRNGKey(5), (D3,), dtype=jnp.float32)
    b3 = 0.05 * jax.random.normal(jax.random.PRNGKey(6), (D3,), dtype=jnp.float32)
    out3 = jax.block_until_ready(
        normalize_gnn_batchnorm(x3, g3, b3, force_two_pass=True,
                                tile_n=64, tile_d=128))
    ref3 = _reference(x3, g3, b3)
    assert jnp.allclose(out3, ref3, atol=2e-5, rtol=2e-5), "two-pass (overhang) mismatch"

    print("KERNEL_OK")
</pallas_src>

<mosaic_0001>
module attributes {stable_mosaic.version = 11 : i64} {
  func.func @_fused_bn_kernel(%arg0: i32, %arg1: memref<64x300xf32, #tpu.memory_space<vmem>>, %arg2: memref<1x300xf32, #tpu.memory_space<vmem>>, %arg3: memref<1x300xf32, #tpu.memory_space<vmem>>, %arg4: memref<64x300xf32, #tpu.memory_space<vmem>>) attributes {dimension_semantics = [#tpu.dimension_semantics<parallel>], iteration_bounds = array<i64: 1>, scalar_prefetch = 0 : i64, scratch_operands = 0 : i64, tpu.core_type = #tpu.core_type<tc>, window_params = [{transform_indices = @transform_0, window_bounds = array<i64: 64, 300>}, {transform_indices = @transform_1, window_bounds = array<i64: 1, 300>}, {transform_indices = @transform_2, window_bounds = array<i64: 1, 300>}, {transform_indices = @transform_3, window_bounds = array<i64: 64, 300>}]} {
    %c0 = arith.constant 0 : index
    %c0_0 = arith.constant 0 : index
    %0 = vector.load %arg1[%c0, %c0_0] : memref<64x300xf32, #tpu.memory_space<vmem>>, vector<64x300xf32>
    %cst = arith.constant dense<0.000000e+00> : vector<300xf32>
    %1 = vector.multi_reduction <add>, %0, %cst [0] : vector<64x300xf32> to vector<300xf32>
    %2 = vector.shape_cast %1 : vector<300xf32> to vector<1x300xf32>
    %cst_1 = arith.constant 1.562500e-02 : f32
    %3 = vector.broadcast %cst_1 : f32 to vector<1x300xf32>
    %4 = arith.mulf %2, %3 : vector<1x300xf32>
    %5 = vector.broadcast %4 : vector<1x300xf32> to vector<64x300xf32>
    %6 = arith.subf %0, %5 : vector<64x300xf32>
    %7 = arith.mulf %6, %6 : vector<64x300xf32>
    %cst_2 = arith.constant dense<0.000000e+00> : vector<300xf32>
    %8 = vector.multi_reduction <add>, %7, %cst_2 [0] : vector<64x300xf32> to vector<300xf32>
    %9 = vector.shape_cast %8 : vector<300xf32> to vector<1x300xf32>
    %cst_3 = arith.constant 1.562500e-02 : f32
    %10 = vector.broadcast %cst_3 : f32 to vector<1x300xf32>
    %11 = arith.mulf %9, %10 : vector<1x300xf32>
    %cst_4 = arith.constant 9.99999974E-6 : f32
    %12 = vector.broadcast %cst_4 : f32 to vector<1x300xf32>
    %13 = arith.addf %11, %12 : vector<1x300xf32>
    %14 = math.rsqrt %13 : vector<1x300xf32>
    %c0_5 = arith.constant 0 : index
    %c0_6 = arith.constant 0 : index
    %15 = vector.load %arg2[%c0_5, %c0_6] : memref<1x300xf32, #tpu.memory_space<vmem>>, vector<1x300xf32>
    %16 = arith.mulf %15, %14 : vector<1x300xf32>
    %17 = vector.broadcast %16 : vector<1x300xf32> to vector<64x300xf32>
    %18 = arith.mulf %6, %17 : vector<64x300xf32>
    %c0_7 = arith.constant 0 : index
    %c0_8 = arith.constant 0 : index
    %19 = vector.load %arg3[%c0_7, %c0_8] : memref<1x300xf32, #tpu.memory_space<vmem>>, vector<1x300xf32>
    %20 = vector.broadcast %19 : vector<1x300xf32> to vector<64x300xf32>
    %21 = arith.addf %18, %20 : vector<64x300xf32>
    %c0_9 = arith.constant 0 : index
    %c0_10 = arith.constant 0 : index
    %22 = vector.load %arg4[%c0_9, %c0_10] : memref<64x300xf32, #tpu.memory_space<vmem>>, vector<64x300xf32>
    tpu.vector_store %arg4[%c0_9, %c0_10], %21 {strides = array<i32>} : memref<64x300xf32, #tpu.memory_space<vmem>>, vector<64x300xf32>,
    return
  }
  func.func @transform_0(%arg0: i32) -> (i32, i32) {
    %c0_i32 = arith.constant 0 : i32
    %c0_i32_0 = arith.constant 0 : i32
    return %c0_i32, %arg0 : i32, i32
  }
  func.func @transform_1(%arg0: i32) -> (i32, i32) {
    %c0_i32 = arith.constant 0 : i32
    %c0_i32_0 = arith.constant 0 : i32
    return %c0_i32, %arg0 : i32, i32
  }
  func.func @transform_2(%arg0: i32) -> (i32, i32) {
    %c0_i32 = arith.constant 0 : i32
    %c0_i32_0 = arith.constant 0 : i32
    return %c0_i32, %arg0 : i32, i32
  }
  func.func @transform_3(%arg0: i32) -> (i32, i32) {
    %c0_i32 = arith.constant 0 : i32
    %c0_i32_0 = arith.constant 0 : i32
    return %c0_i32, %arg0 : i32, i32
  }
}

</mosaic_0001>

<bundles_post_ra>
// kernel: normalize_gnn_batchnorm.1
= control target key start
LH: loop header
LB: loop body
LE: loop exit
PB: predicated region body
PF: predicated region fallthrough
CT: control target
= control target key end

     0   :  { %8 = vsyncpa [#allocation3], 0  ;;  %s729_s0 = inlined_call_operand.hbm [shape: f32[64,300], index: 0, kind: input, shape index: {}]   ;;  %s730_s1 = inlined_call_operand.vmem [shape: f32[1,300], index: 1, kind: input, shape index: {}]   ;;  %s731_s2 = inlined_call_operand.vmem [shape: f32[1,300], index: 2, kind: input, shape index: {}]   ;;  %s732_s3 = inlined_call_operand.hbm [shape: f32[64,300], index: 3, kind: output, shape index: {}]  }
   0x1   :  { %9 = vsyncpa [#allocation4], 0  ;;  %s418_s12 = smov [#allocation2]   ;;  %s370_s16 = scalar_lea.hbm %s729_s0, 3072 }
   0x2   :  { %s15_s13 = sshll.u32 %s418_s12, 4  ;;  %p371_p0 = scmp.ne.s32.totalorder %s729_s0, %s370_s16  ;;  %s16_s13 = int_to_ptr.vmem [resolvable:$true] %s15_s13 }
   0x3   :  { %p374_p1 = scmp.lt.u32.totalorder %s370_s16, %s729_s0 }
   0x5   :  { %p376_p2 = pnand %p374_p1, %p371_p0 }
   0x7   :  { %379 = shalt.err (!%p376_p2)
}
   0x8   :  { %s380_s21 = scalar_lea.vmem %s16_s13, 3072  ;;  %p385_p4 = scmp.lt.s32.totalorder %s16_s13, %s16_s13 }
   0x9   :  { %p381_p3 = scmp.ne.s32.totalorder %s16_s13, %s380_s21  ;;  %p386_p5 = scmp.lt.s32.totalorder %s380_s21, %s380_s21 }
   0xb   :  { %p387_p6 = por %p386_p5, %p385_p4 }
   0xd   :  { %p388_p7 = pnand %p387_p6, %p381_p3 }
   0xf   :  { %391 = shalt.err (!%p388_p7)
}
  0x10   :  { %s419_s22 = smov 384   ;;  %s420_s23 = smov 24  }
  0x11   :  { %21 = dma.hbm_to_vmem [thread:$0]  %s729_s0, 3072, %s16_s13, [#allocation3], %s419_s22, %s419_s22, %s420_s23  }
  0x12   :  { %414 = dma.done.wait [#allocation3], 3072  }
  0x13   :  { %415 = vsyncadd [#allocation3], 4294964224  ;;  %vm79_vm0 = vcmask 359424   ;;  %v458_v0 = vld [vmem:[#allocation2] sm:$0xff]  ;;  %v460_v1 = vld [vmem:[#allocation2 + $0x8] sm:$0xff] }
  0x14   :  { %v462_v2 = vld [vmem:[#allocation2 + $0x10] sm:$0xff]  ;;  %v464_v3 = vld [vmem:[#allocation2 + $0x18] sm:$0xff]  ;;  %v466_v4 = vld [vmem:[#allocation2 + $0x20] sm:$0xff] }
  0x15   :  { %v468_v5 = vld [vmem:[#allocation2 + $0x28] sm:$0xff]  ;;  %v80_v6 = vsel %vm79_vm0, %v462_v2, 0.0  ;;  %v472_v7 = vld [vmem:[#allocation2 + $0x30] sm:$0xff]  ;;  %v474_v8 = vld [vmem:[#allocation2 + $0x38] sm:$0xff]  ;;  %v53_v10 = vadd.f32 %v464_v3, %v458_v0  ;;  %v66_v11 = vadd.f32 %v466_v4, %v460_v1 }
  0x16   :  { %v476_v9 = vld [vmem:[#allocation2 + $0x40] sm:$0xff]  ;;  %v81_v12 = vsel %vm79_vm0, %v468_v5, 0.0  ;;  %v484_v13 = vld [vmem:[#allocation2 + $0x48] sm:$0xff]  ;;  %v486_v14 = vld [vmem:[#allocation2 + $0x50] sm:$0xff] }
  0x17   :  { %v488_v15 = vld [vmem:[#allocation2 + $0x58] sm:$0xff]  ;;  %v82_v16 = vadd.f32 %v81_v12, %v80_v6  ;;  %v83_v17 = vsel %vm79_vm0, %v476_v9, 0.0  ;;  %v492_v18 = vld [vmem:[#allocation2 + $0x70] sm:$0xff]  ;;  %v54_v19 = vadd.f32 %v53_v10, %v472_v7  ;;  %v67_v20 = vadd.f32 %v66_v11, %v474_v8  ;;  %v498_v22 = vld [vmem:[#allocation2 + $0x60] sm:$0xff] }
  0x18   :  { %v85_v21 = vsel %vm79_vm0, %v488_v15, 0.0  ;;  %v500_v23 = vld [vmem:[#allocation2 + $0x68] sm:$0xff]  ;;  %v87_v28 = vsel %vm79_vm0, %v492_v18, 0.0  ;;  %v44_v29 = vld [vmem:[#allocation2 + $0x78] sm:$0xff]  ;;  %v45_v30 = vld [vmem:[#allocation2 + $0x80] sm:$0xff] }
  0x19   :  { %v502_v24 = vld [vmem:[#allocation2 + $0x88] sm:$0xff]  ;;  %v84_v25 = vadd.f32 %v83_v17, %v82_v16  ;;  %v55_v26 = vadd.f32 %v54_v19, %v484_v13  ;;  %v68_v27 = vadd.f32 %v67_v20, %v486_v14  ;;  %v508_v31 = vld [vmem:[#allocation2 + $0xa0] sm:$0xff]  ;;  %v47_v36 = vld [vmem:[#allocation2 + $0x90] sm:$0xff] }
  0x1a   :  { %v89_v35 = vsel %vm79_vm0, %v502_v24, 0.0  ;;  %v48_v37 = vld [vmem:[#allocation2 + $0x98] sm:$0xff]  ;;  %v91_v42 = vsel %vm79_vm0, %v508_v31, 0.0  ;;  %v50_v43 = vld [vmem:[#allocation2 + $0xa8] sm:$0xff]  ;;  %v518_v44 = vld [vmem:[#allocation2 + $0xb0] sm:$0xff] }
  0x1b   :  { %v86_v32 = vadd.f32 %v85_v21, %v84_v25  ;;  %v56_v33 = vadd.f32 %v55_v26, %v498_v22  ;;  %v69_v34 = vadd.f32 %v68_v27, %v500_v23  ;;  %v514_v38 = vld [vmem:[#allocation2 + $0xb8] sm:$0xff] }
  0x1c   :  { %v93_v48 = vsel %vm79_vm0, %v514_v38, 0.0 }
  0x1d   :  { %v88_v39 = vadd.f32 %v87_v28, %v86_v32  ;;  %v57_v40 = vadd.f32 %v56_v33, %v44_v29  ;;  %v70_v41 = vadd.f32 %v69_v34, %v45_v30 }
  0x1f   :  { %v90_v45 = vadd.f32 %v89_v35, %v88_v39  ;;  %v58_v46 = vadd.f32 %v57_v40, %v47_v36  ;;  %v71_v47 = vadd.f32 %v70_v41, %v48_v37 }
  0x21   :  { %v92_v49 = vadd.f32 %v91_v42, %v90_v45  ;;  %v59_v50 = vadd.f32 %v58_v46, %v50_v43  ;;  %v72_v51 = vadd.f32 %v71_v47, %v518_v44 }
  0x23   :  { %v94_v52 = vadd.f32 %v93_v48, %v92_v49  ;;  %v60_v53 = vrot.slane %v59_v50, 4  ;;  %v73_v54 = vrot.slane %v72_v51, 4 }
  0x25   :  { %v95_v55 = vrot.slane %v94_v52, 4  ;;  %v61_v56 = vadd.f32 %v60_v53, %v59_v50  ;;  %v74_v57 = vadd.f32 %v73_v54, %v72_v51 }
  0x27   :  { %v96_v58 = vadd.f32 %v95_v55, %v94_v52  ;;  %v62_v59 = vrot.slane %v61_v56, 2  ;;  %v75_v60 = vrot.slane %v74_v57, 2 }
  0x29   :  { %v97_v61 = vrot.slane %v96_v58, 2  ;;  %v63_v62 = vadd.f32 %v62_v59, %v61_v56  ;;  %v76_v63 = vadd.f32 %v75_v60, %v74_v57 }
  0x2b   :  { %v98_v6 = vadd.f32 %v97_v61, %v96_v58  ;;  %v64_v10 = vrot.slane %v63_v62, 1  ;;  %v77_v11 = vrot.slane %v76_v63, 1 }
  0x2d   :  { %v99_v12 = vrot.slane %v98_v6, 1  ;;  %v65_v16 = vadd.f32 %v64_v10, %v63_v62  ;;  %v78_v17 = vadd.f32 %v77_v11, %v76_v63 }
  0x2f   :  { %v100_v19 = vadd.f32 %v99_v12, %v98_v6  ;;  %v101_v20 = vmul.f32 0.015625, %v65_v16  ;;  %v102_v21 = vmul.f32 0.015625, %v78_v17 }
  0x31   :  { %v103_v25 = vmul.f32 0.015625, %v100_v19  ;;  %v524_v26 = vsub.f32 %v458_v0, %v101_v20  ;;  %v527_v27 = vsub.f32 %v460_v1, %v102_v21  ;;  %v530_v28 = vsub.f32 %v464_v3, %v101_v20 }
  0x32   :  { %v533_v32 = vsub.f32 %v466_v4, %v102_v21  ;;  %v542_v35 = vsub.f32 %v472_v7, %v101_v20  ;;  %v545_v0 = vsub.f32 %v474_v8, %v102_v21  ;;  %v551_v3 = vsub.f32 %v484_v13, %v101_v20 }
  0x33   :  { %v536_v33 = vsub.f32 %v462_v2, %v103_v25  ;;  %v539_v34 = vsub.f32 %v468_v5, %v103_v25  ;;  %v548_v1 = vsub.f32 %v476_v9, %v103_v25  ;;  %v554_v4 = vsub.f32 %v486_v14, %v102_v21 }
  0x34   :  { %v557_v2 = vsub.f32 %v488_v15, %v103_v25  ;;  %v560_v5 = vsub.f32 %v498_v22, %v101_v20  ;;  %v563_v7 = vsub.f32 %v500_v23, %v102_v21  ;;  %v566_v8 = vsub.f32 %v492_v18, %v103_v25 }
  0x35   :  { %v568_v9 = vsub.f32 %v44_v29, %v101_v20  ;;  %v570_v39 = vsub.f32 %v45_v30, %v102_v21  ;;  %v573_v13 = vsub.f32 %v502_v24, %v103_v25  ;;  %v128_v14 = vmul.f32 %v524_v26, %v524_v26 }
  0x36   :  { %v129_v15 = vmul.f32 %v527_v27, %v527_v27  ;;  %v130_v22 = vmul.f32 %v536_v33, %v536_v33  ;;  %v131_v18 = vmul.f32 %v530_v28, %v530_v28  ;;  %v132_v23 = vmul.f32 %v533_v32, %v533_v32 }
  0x37   :  { %v133_v29 = vmul.f32 %v539_v34, %v539_v34  ;;  %v587_v24 = vsub.f32 %v47_v36, %v101_v20  ;;  %v589_v30 = vsub.f32 %v48_v37, %v102_v21  ;;  %v592_v40 = vsub.f32 %v508_v31, %v103_v25 }
  0x38   :  { %v136_v41 = vmul.f32 %v548_v1, %v548_v1  ;;  %v596_v42 = vsub.f32 %v50_v43, %v101_v20  ;;  %v134_v45 = vmul.f32 %v542_v35, %v542_v35  ;;  %v135_v46 = vmul.f32 %v545_v0, %v545_v0 }
  0x39   :  { %v139_v36 = vmul.f32 %v557_v2, %v557_v2  ;;  %v605_v37 = vsub.f32 %v514_v38, %v103_v25  ;;  %v137_v31 = vmul.f32 %v551_v3, %v551_v3  ;;  %v138_v47 = vmul.f32 %v554_v4, %v554_v4 }
  0x3a   :  { %v142_v43 = vmul.f32 %v566_v8, %v566_v8  ;;  %v152_v48 = vadd.f32 %v131_v18, %v128_v14  ;;  %v165_v49 = vadd.f32 %v132_v23, %v129_v15  ;;  %v178_v50 = vsel %vm79_vm0, %v130_v22, 0.0 }
  0x3b   :  { %v179_v51 = vsel %vm79_vm0, %v133_v29, 0.0  ;;  %v140_v52 = vmul.f32 %v560_v5, %v560_v5  ;;  %v141_v38 = vmul.f32 %v563_v7, %v563_v7  ;;  %v181_v54 = vsel %vm79_vm0, %v136_v41, 0.0 }
  0x3c   :  { %v180_v53 = vadd.f32 %v179_v51, %v178_v50  ;;  %v145_v55 = vmul.f32 %v573_v13, %v573_v13  ;;  %v153_v56 = vadd.f32 %v152_v48, %v134_v45  ;;  %v166_v57 = vadd.f32 %v165_v49, %v135_v46 }
  0x3d   :  { %v183_v58 = vsel %vm79_vm0, %v139_v36, 0.0  ;;  %v624_v59 = vsub.f32 %v518_v44, %v102_v21  ;;  %v143_v60 = vmul.f32 %v568_v9, %v568_v9  ;;  %v144_v61 = vmul.f32 %v570_v39, %v570_v39 }
  0x3e   :  { %v182_v62 = vadd.f32 %v181_v54, %v180_v53  ;;  %v148_v63 = vmul.f32 %v592_v40, %v592_v40  ;;  %v154_v6 = vadd.f32 %v153_v56, %v137_v31  ;;  %v167_v10 = vadd.f32 %v166_v57, %v138_v47 }
  0x3f   :  { %v185_v11 = vsel %vm79_vm0, %v142_v43, 0.0  ;;  %v146_v12 = vmul.f32 %v587_v24, %v587_v24  ;;  %v147_v44 = vmul.f32 %v589_v30, %v589_v30  ;;  %v151_v17 = vmul.f32 %v605_v37, %v605_v37 }
  0x40   :  { %v184_v16 = vadd.f32 %v183_v58, %v182_v62  ;;  %v155_v19 = vadd.f32 %v154_v6, %v140_v52  ;;  %v168_v20 = vadd.f32 %v167_v10, %v141_v38  ;;  %v187_v21 = vsel %vm79_vm0, %v145_v55, 0.0 }
  0x41   :  { %v149_v25 = vmul.f32 %v596_v42, %v596_v42  ;;  %v150_v15 = vmul.f32 %v624_v59, %v624_v59  ;;  %v189_v23 = vsel %vm79_vm0, %v148_v63, 0.0  ;;  %v191_v46 = vsel %vm79_vm0, %v151_v17, 0.0 }
  0x42   :  { %v186_v14 = vadd.f32 %v185_v11, %v184_v16  ;;  %v156_v22 = vadd.f32 %v155_v19, %v143_v60  ;;  %v169_v18 = vadd.f32 %v168_v20, %v144_v61  ;;  %v421_v20 = vmov 1966171168  }
  0x44   :  { %v188_v29 = vadd.f32 %v187_v21, %v186_v14  ;;  %v157_v41 = vadd.f32 %v156_v22, %v146_v12  ;;  %v170_v45 = vadd.f32 %v169_v18, %v147_v44  ;;  %v214_v21 = vunpack.c.l.s4 %v421_v20 }
  0x46   :  { %v190_v36 = vadd.f32 %v189_v23, %v188_v29  ;;  %v158_v31 = vadd.f32 %v157_v41, %v149_v25  ;;  %v171_v47 = vadd.f32 %v170_v45, %v150_v15  ;;  %v216_v25 = vlaneseq }
  0x47   :  { %v215_v14 = vunpack.c.0.s8 %v214_v21 }
  0x48   :  { %v192_v43 = vadd.f32 %v191_v46, %v190_v36  ;;  %v159_v48 = vrot.slane %v158_v31, 4  ;;  %v172_v49 = vrot.slane %v171_v47, 4  ;;  %v217_v15 = vshrl.u32 %v216_v25, 7 }
  0x4a   :  { %v193_v50 = vrot.slane %v192_v43, 4  ;;  %v160_v51 = vadd.f32 %v159_v48, %v158_v31  ;;  %v173_v52 = vadd.f32 %v172_v49, %v171_v47  ;;  %v218_v22 = vsub.s32 %v215_v14, %v217_v15  ;;  %v208_v31 = vld [vmem:[%s730_s1] sm:$0x7]  ;;  %s422_s1 = smov [#allocation5]  }
  0x4b   :  { %v277_v48 = vld [vmem:[%s731_s2] sm:$0x7]  ;;  %v244_v49 = vsub.s32 1, %v217_v15  ;;  %s347_s2 = sshll.u32 %s422_s1, 4  ;;  %s348_s2 = int_to_ptr.vmem [resolvable:$true] %s347_s2 }
  0x4c   :  { %v194_v38 = vadd.f32 %v193_v50, %v192_v43  ;;  %v161_v53 = vrot.slane %v160_v51, 2  ;;  %v174_v54 = vrot.slane %v173_v52, 2  ;;  %v240_v43 = vsub.s32 0, %v217_v15  ;;  %s392_s29 = scalar_lea.vmem %s348_s2, 3072  ;;  %p397_p9 = scmp.lt.s32.totalorder %s348_s2, %s348_s2 }
  0x4d   :  { %v248_v50 = vsub.s32 2, %v217_v15  ;;  %p393_p8 = scmp.ne.s32.totalorder %s348_s2, %s392_s29  ;;  %p398_p10 = scmp.lt.s32.totalorder %s392_s29, %s392_s29 }
  0x4e   :  { %v195_v55 = vrot.slane %v194_v38, 2  ;;  %v162_v56 = vadd.f32 %v161_v53, %v160_v51  ;;  %v175_v57 = vadd.f32 %v174_v54, %v173_v52  ;;  %v652_v52 = vrot.slane %v277_v48, %v240_v43 }
  0x4f   :  { %p399_p11 = por %p398_p10, %p397_p9 }
  0x50   :  { %v196_v58 = vadd.f32 %v195_v55, %v194_v38  ;;  %v163_v60 = vrot.slane %v162_v56, 1  ;;  %v176_v61 = vrot.slane %v175_v57, 1  ;;  %v654_v38 = vrot.slane %v277_v48, %v244_v49 }
  0x51   :  { %p400_p12 = pnand %p399_p11, %p393_p8 }
  0x52   :  { %v197_v62 = vrot.slane %v196_v58, 1  ;;  %v164_v63 = vadd.f32 %v163_v60, %v162_v56  ;;  %v177_v6 = vadd.f32 %v176_v61, %v175_v57  ;;  %v656_v56 = vrot.slane %v277_v48, %v248_v50 }
  0x54   :  { %v198_v10 = vadd.f32 %v197_v62, %v196_v58  ;;  %v199_v11 = vmul.f32 0.015625, %v164_v63  ;;  %v200_v12 = vmul.f32 0.015625, %v177_v6 }
  0x56   :  { %v201_v44 = vmul.f32 0.015625, %v198_v10  ;;  %v202_v16 = vadd.f32 1e-05, %v199_v11  ;;  %v203_v17 = vadd.f32 1e-05, %v200_v12 }
  0x58   :  { %v204_v19 = vadd.f32 1e-05, %v201_v44  ;;  %364 = vrsqrt.f32 %v202_v16 }
  0x59   :  { %366 = vrsqrt.f32 %v203_v17 }
  0x5a   :  { %368 = vrsqrt.f32 %v204_v19 }
  0x62   :  { %v365_v18 = vpop.eup %364 }
  0x63   :  { %v367_v23 = vpop.eup %366 }
  0x64   :  { %v369_v29 = vpop.eup %368  ;;  %v212_v41 = vcombine.low %v365_v18, %v367_v23 }
  0x65   :  { %v226_v45 = vrot.slane %v369_v29, %v218_v22 }
  0x66   :  { %v219_v46 = vrot.slane %v212_v41, %v218_v22 }
  0x68   :  { %v227_v36 = vcombine.low %v219_v46, %v226_v45 }
  0x6a   :  { %v234_v47 = vrot.slane %v227_v36, %v218_v22 }
  0x6c   :  { %v236_v51 = vmul.f32 %v234_v47, %v208_v31 }
  0x6e   :  { %v241_v53 = vrot.slane %v236_v51, %v240_v43  ;;  %v245_v54 = vrot.slane %v236_v51, %v244_v49  ;;  %v249_v55 = vrot.slane %v236_v51, %v248_v50 }
  0x70   :  { %v253_v57 = vmul.f32 %v241_v53, %v524_v26  ;;  %v254_v58 = vmul.f32 %v245_v54, %v527_v27  ;;  %v255_v60 = vmul.f32 %v249_v55, %v536_v33  ;;  %v256_v61 = vmul.f32 %v241_v53, %v530_v28 }
  0x71   :  { %v257_v62 = vmul.f32 %v245_v54, %v533_v32  ;;  %v258_v63 = vmul.f32 %v249_v55, %v539_v34  ;;  %v259_v6 = vmul.f32 %v241_v53, %v542_v35  ;;  %v260_v10 = vmul.f32 %v245_v54, %v545_v0 }
  0x72   :  { %v294_v11 = vadd.f32 %v652_v52, %v253_v57  ;;  %v295_v12 = vadd.f32 %v654_v38, %v254_v58  ;;  %v296_v26 = vadd.f32 %v656_v56, %v255_v60  ;;  %v297_v27 = vadd.f32 %v652_v52, %v256_v61 }
  0x73   :  { %v298_v33 = vadd.f32 %v654_v38, %v257_v62  ;;  %v299_v28 = vadd.f32 %v656_v56, %v258_v63  ;;  %v300_v32 = vadd.f32 %v652_v52, %v259_v6  ;;  %v301_v34 = vadd.f32 %v654_v38, %v260_v10 }
  0x74   :  { %318 = vst [vmem:[#allocation5] sm:$0xff] %v294_v11  ;;  %319 = vst [vmem:[#allocation5 + $0x8] sm:$0xff] %v295_v12  ;;  %v261_v35 = vmul.f32 %v249_v55, %v548_v1  ;;  %v262_v0 = vmul.f32 %v241_v53, %v551_v3  ;;  %v263_v44 = vmul.f32 %v245_v54, %v554_v4 }
  0x75   :  { %320 = vst.msk [vmem:[#allocation5 + $0x10] sm:$0xff] %vm79_vm0, %v296_v26  ;;  %321 = vst [vmem:[#allocation5 + $0x18] sm:$0xff] %v297_v27  ;;  %v264_v16 = vmul.f32 %v249_v55, %v557_v2  ;;  %v265_v17 = vmul.f32 %v241_v53, %v560_v5  ;;  %v266_v19 = vmul.f32 %v245_v54, %v563_v7 }
  0x76   :  { %322 = vst [vmem:[#allocation5 + $0x20] sm:$0xff] %v298_v33  ;;  %323 = vst.msk [vmem:[#allocation5 + $0x28] sm:$0xff] %vm79_vm0, %v299_v28  ;;  %v267_v20 = vmul.f32 %v249_v55, %v566_v8  ;;  %v268_v21 = vmul.f32 %v241_v53, %v568_v9  ;;  %v302_v1 = vadd.f32 %v656_v56, %v261_v35 }
  0x77   :  { %324 = vst [vmem:[#allocation5 + $0x30] sm:$0xff] %v300_v32  ;;  %325 = vst [vmem:[#allocation5 + $0x38] sm:$0xff] %v301_v34  ;;  %v303_v3 = vadd.f32 %v652_v52, %v262_v0  ;;  %v304_v4 = vadd.f32 %v654_v38, %v263_v44  ;;  %v305_v2 = vadd.f32 %v656_v56, %v264_v16 }
  0x78   :  { %v306_v25 = vadd.f32 %v652_v52, %v265_v17  ;;  %v307_v14 = vadd.f32 %v654_v38, %v266_v19  ;;  %v308_v5 = vadd.f32 %v656_v56, %v267_v20  ;;  %v309_v7 = vadd.f32 %v652_v52, %v268_v21  ;;  %326 = vst.msk [vmem:[#allocation5 + $0x40] sm:$0xff] %vm79_vm0, %v302_v1 }
  0x79   :  { %327 = vst [vmem:[#allocation5 + $0x48] sm:$0xff] %v303_v3  ;;  %328 = vst [vmem:[#allocation5 + $0x50] sm:$0xff] %v304_v4  ;;  %v269_v8 = vmul.f32 %v245_v54, %v570_v39  ;;  %v270_v9 = vmul.f32 %v249_v55, %v573_v13  ;;  %v271_v15 = vmul.f32 %v241_v53, %v587_v24 }
  0x7a   :  { %329 = vst.msk [vmem:[#allocation5 + $0x58] sm:$0xff] %vm79_vm0, %v305_v2  ;;  %v272_v22 = vmul.f32 %v245_v54, %v589_v30  ;;  %330 = vst [vmem:[#allocation5 + $0x60] sm:$0xff] %v306_v25  ;;  %v273_v18 = vmul.f32 %v249_v55, %v592_v40  ;;  %v274_v23 = vmul.f32 %v241_v53, %v596_v42 }
  0x7b   :  { %331 = vst [vmem:[#allocation5 + $0x68] sm:$0xff] %v307_v14  ;;  %332 = vst.msk [vmem:[#allocation5 + $0x70] sm:$0xff] %vm79_vm0, %v308_v5  ;;  %v275_v29 = vmul.f32 %v245_v54, %v624_v59  ;;  %v276_v39 = vmul.f32 %v249_v55, %v605_v37  ;;  %v310_v13 = vadd.f32 %v654_v38, %v269_v8 }
  0x7c   :  { %333 = vst [vmem:[#allocation5 + $0x78] sm:$0xff] %v309_v7  ;;  %v311_v24 = vadd.f32 %v656_v56, %v270_v9  ;;  %v312_v30 = vadd.f32 %v652_v52, %v271_v15  ;;  %v313_v41 = vadd.f32 %v654_v38, %v272_v22  ;;  %v314_v45 = vadd.f32 %v656_v56, %v273_v18 }
  0x7d   :  { %v315_v46 = vadd.f32 %v652_v52, %v274_v23  ;;  %v316_v40 = vadd.f32 %v654_v38, %v275_v29  ;;  %v317_v42 = vadd.f32 %v656_v56, %v276_v39  ;;  %334 = vst [vmem:[#allocation5 + $0x80] sm:$0xff] %v310_v13 }
  0x7e   :  { %335 = vst.msk [vmem:[#allocation5 + $0x88] sm:$0xff] %vm79_vm0, %v311_v24  ;;  %336 = vst [vmem:[#allocation5 + $0x90] sm:$0xff] %v312_v30 }
  0x7f   :  { %337 = vst [vmem:[#allocation5 + $0x98] sm:$0xff] %v313_v41  ;;  %338 = vst.msk [vmem:[#allocation5 + $0xa0] sm:$0xff] %vm79_vm0, %v314_v45 }
  0x80   :  { %339 = vst [vmem:[#allocation5 + $0xa8] sm:$0xff] %v315_v46  ;;  %340 = vst [vmem:[#allocation5 + $0xb0] sm:$0xff] %v316_v40 }
  0x81   :  { %341 = vst.msk [vmem:[#allocation5 + $0xb8] sm:$0xff] %vm79_vm0, %v317_v42 }
  0x82   :  { %403 = shalt.err (!%p400_p12)
}
  0x83   :  { %s404_s5 = scalar_lea.hbm %s732_s3, 3072 }
  0x84   :  { %p405_p13 = scmp.ne.s32.totalorder %s732_s3, %s404_s5  ;;  %p408_p0 = scmp.lt.u32.totalorder %s404_s5, %s732_s3 }
  0x86   :  { %p410_p1 = pnand %p408_p0, %p405_p13 }
  0x88   :  { %413 = shalt.err (!%p410_p1)
}
  0x89   :  { %353 = dma.vmem_to_hbm [thread:$0]  %s348_s2, 3072, %s732_s3, [#allocation4], %s419_s22, %s419_s22, %s420_s23  }
  0x8a   :  { %416 = dma.done.wait [#allocation4], 3072  }
  0x8b   :  { %417 = vsyncadd [#allocation4], 4294964224 }
  0x8c   :  { %357 = vsyncpa [#allocation3], 1 }
  0x8d   :  { %358 = vsyncpa [#allocation4], 1 }

</bundles_post_ra>
